<compile_context>
chip_gen: v7x
topology: tpu7x:2x2x1
jax: 0.10.0
libtpu: 0.0.40
codegen_flags: <defaults>
</compile_context>

<pallas_src>
import jax
import jax.numpy as jnp
from jax.experimental import pallas as pl
from jax.experimental.pallas import tpu as pltpu

FEAT = 10  # Linear(10, 10) x3


def fused_affine_kernel(wT_ref, b_ref, x_ref, o_ref):
    # out_tile = x_tile @ W_eff^T + b_eff      (natural (rows, feat) layout)
    o_ref[...] = (
        jnp.dot(x_ref[...], wT_ref[...], preferred_element_type=jnp.float32)
        + b_ref[...]
    ).astype(o_ref.dtype)


def _round_up(a, m):
    return ((a + m - 1) // m) * m


def fold_params(params):
    """Fold the 3 chained affine layers into one: y = x @ W_eff^T + b_eff.

    Call once per parameter set (hoisted out of the per-forward path).
    Note: folding reorders fp32 arithmetic, so results match the layer-by-layer
    module only to ~1e-5..1e-4, not bit-exactly.
    """
    w1, w2, w3 = params["w1"], params["w2"], params["w3"]
    b1, b2, b3 = params["b1"], params["b2"], params["b3"]
    w_eff_t = w1.T @ w2.T @ w3.T                      # == (w3 @ w2 @ w1).T, (10, 10)
    b_eff = (b1 @ w2.T + b2) @ w3.T + b3              # (1, 10) row bias
    return w_eff_t, b_eff


def test_model_forward(x, w_eff_t, b_eff, *, tb_max=8192):
    """x: (B, 10) f32.  w_eff_t: (10, 10).  b_eff: (1, 10).  Returns (B, 10)."""
    B = x.shape[0]

    # Pad the batch only to a multiple of 8 (sublane requirement for the block
    # shape); no padding up to a whole tile -> no wasted HBM bandwidth.
    b_pad = _round_up(B, 8)
    x_in = x if b_pad == B else jnp.zeros((b_pad, FEAT), x.dtype).at[:B].set(x)

    # Tile size: as large as VMEM comfortably allows; ensure >=2 grid steps for
    # mid/large batches so v7x's two TensorCores both get work.
    tb = min(tb_max, b_pad)
    if b_pad > 128:
        tb = min(tb, _round_up(pl.cdiv(b_pad, 2), 8))
    tb = max(tb, 8)
    grid = (pl.cdiv(b_pad, tb),)                      # ragged last tile is fine

    out = pl.pallas_call(
        fused_affine_kernel,
        out_shape=jax.ShapeDtypeStruct((b_pad, FEAT), x.dtype),
        grid_spec=pltpu.PrefetchScalarGridSpec(
            num_scalar_prefetch=0,
            grid=grid,
            in_specs=[
                pl.BlockSpec((FEAT, FEAT), lambda i: (0, 0)),  # W_eff^T, resident
                pl.BlockSpec((1, FEAT), lambda i: (0, 0)),     # b_eff, resident
                pl.BlockSpec((tb, FEAT), lambda i: (i, 0)),    # x batch tile
            ],
            out_specs=pl.BlockSpec((tb, FEAT), lambda i: (i, 0)),
        ),
        compiler_params=pltpu.CompilerParams(
            dimension_semantics=("parallel",),
            vmem_limit_bytes=32 * 1024 * 1024,
        ),
        cost_estimate=pl.CostEstimate(
            flops=2 * FEAT * FEAT * b_pad,
            transcendentals=0,
            bytes_accessed=4 * (2 * b_pad * FEAT + FEAT * FEAT + FEAT),
        ),
    )(w_eff_t, b_eff, x_in)

    return out if b_pad == B else out[:B]


def init_params(key):
    """nn.Linear-shaped params: W (out,in)=(10,10), b stored as (1,10)."""
    ks = jax.random.split(key, 6)
    bound = 1.0 / jnp.sqrt(FEAT)  # PyTorch default uniform bound

    def u(k, shape):
        return jax.random.uniform(k, shape, jnp.float32, -bound, bound)

    return {
        "w1": u(ks[0], (FEAT, FEAT)), "b1": u(ks[1], (1, FEAT)),
        "w2": u(ks[2], (FEAT, FEAT)), "b2": u(ks[3], (1, FEAT)),
        "w3": u(ks[4], (FEAT, FEAT)), "b3": u(ks[5], (1, FEAT)),
    }


def reference_forward(x, p):
    h = x @ p["w1"].T + p["b1"]
    h = h @ p["w2"].T + p["b2"]
    return h @ p["w3"].T + p["b3"]


if __name__ == "__main__":
    key = jax.random.PRNGKey(0)
    k_x, k_p = jax.random.split(key)

    B = 8
    x = jax.random.normal(k_x, (B, FEAT), jnp.float32)
    params = init_params(k_p)

    w_eff_t, b_eff = fold_params(params)          # hoisted: once per param set
    out = test_model_forward(x, w_eff_t, b_eff)
    out = jax.block_until_ready(out)

    ref = reference_forward(x, params)
    assert out.shape == (B, FEAT), out.shape
    # folded affine map reorders fp32 rounding slightly -> modest tolerance
    assert jnp.allclose(out, ref, atol=1e-4, rtol=1e-4), "mismatch vs JAX reference"

    print("KERNEL_OK")
</pallas_src>

<mosaic_0001>
module attributes {stable_mosaic.version = 11 : i64} {
  func.func @fused_affine_kernel(%arg0: i32, %arg1: memref<10x10xf32, #tpu.memory_space<vmem>>, %arg2: memref<1x10xf32, #tpu.memory_space<vmem>>, %arg3: memref<8x10xf32, #tpu.memory_space<vmem>>, %arg4: memref<8x10xf32, #tpu.memory_space<vmem>>) attributes {dimension_semantics = [#tpu.dimension_semantics<parallel>], iteration_bounds = array<i64: 1>, scalar_prefetch = 0 : i64, scratch_operands = 0 : i64, tpu.core_type = #tpu.core_type<tc>, window_params = [{pipeline_mode = #tpu.pipeline_mode<synchronous>, transform_indices = @transform_0, window_bounds = array<i64: 10, 10>}, {pipeline_mode = #tpu.pipeline_mode<synchronous>, transform_indices = @transform_1, window_bounds = array<i64: 1, 10>}, {transform_indices = @transform_2, window_bounds = array<i64: 8, 10>}, {transform_indices = @transform_3, window_bounds = array<i64: 8, 10>}]} {
    %c0 = arith.constant 0 : index
    %c0_0 = arith.constant 0 : index
    %0 = vector.load %arg3[%c0, %c0_0] : memref<8x10xf32, #tpu.memory_space<vmem>>, vector<8x10xf32>
    %c0_1 = arith.constant 0 : index
    %c0_2 = arith.constant 0 : index
    %1 = vector.load %arg1[%c0_1, %c0_2] : memref<10x10xf32, #tpu.memory_space<vmem>>, vector<10x10xf32>
    %cst = arith.constant dense<0.000000e+00> : vector<8x10xf32>
    %2 = tpu.matmul %0, %1, %cst {dimension_numbers = #tpu.dot_dimension_numbers<[1], [0], [0], [1], [0, 0, 1, 1], [], []>} : vector<8x10xf32>, vector<10x10xf32>, vector<8x10xf32> -> vector<8x10xf32>
    %c0_3 = arith.constant 0 : index
    %c0_4 = arith.constant 0 : index
    %3 = vector.load %arg2[%c0_3, %c0_4] : memref<1x10xf32, #tpu.memory_space<vmem>>, vector<1x10xf32>
    %4 = vector.broadcast %3 : vector<1x10xf32> to vector<8x10xf32>
    %5 = arith.addf %2, %4 : vector<8x10xf32>
    %c0_5 = arith.constant 0 : index
    %c0_6 = arith.constant 0 : index
    %6 = vector.load %arg4[%c0_5, %c0_6] : memref<8x10xf32, #tpu.memory_space<vmem>>, vector<8x10xf32>
    tpu.vector_store %arg4[%c0_5, %c0_6], %5 {strides = array<i32>} : memref<8x10xf32, #tpu.memory_space<vmem>>, vector<8x10xf32>,
    return
  }
  func.func @transform_0(%arg0: i32) -> (i32, i32) {
    %c0_i32 = arith.constant 0 : i32
    %c0_i32_0 = arith.constant 0 : i32
    %c0_i32_1 = arith.constant 0 : i32
    return %c0_i32, %c0_i32_0 : i32, i32
  }
  func.func @transform_1(%arg0: i32) -> (i32, i32) {
    %c0_i32 = arith.constant 0 : i32
    %c0_i32_0 = arith.constant 0 : i32
    %c0_i32_1 = arith.constant 0 : i32
    return %c0_i32, %c0_i32_0 : i32, i32
  }
  func.func @transform_2(%arg0: i32) -> (i32, i32) {
    %c0_i32 = arith.constant 0 : i32
    %c0_i32_0 = arith.constant 0 : i32
    return %arg0, %c0_i32 : i32, i32
  }
  func.func @transform_3(%arg0: i32) -> (i32, i32) {
    %c0_i32 = arith.constant 0 : i32
    %c0_i32_0 = arith.constant 0 : i32
    return %arg0, %c0_i32 : i32, i32
  }
}

</mosaic_0001>

<bundles_post_ra>
// kernel: tpu_custom_call.1
= control target key start
LH: loop header
LB: loop body
LE: loop exit
PB: predicated region body
PF: predicated region fallthrough
CT: control target
= control target key end

     0   :  { %8 = vsyncpa [#allocation3], 0  ;;  %s312_s0 = inlined_call_operand.hbm [shape: f32[10,10], index: 0, kind: input, shape index: {}]   ;;  %s313_s1 = inlined_call_operand.vmem [shape: f32[1,10], index: 1, kind: input, shape index: {}]   ;;  %s314_s2 = inlined_call_operand.hbm [shape: f32[8,10], index: 2, kind: input, shape index: {}]   ;;  %s315_s3 = inlined_call_operand.hbm [shape: f32[8,10], index: 3, kind: output, shape index: {}]  }
   0x1   :  { %9 = vsyncpa [#allocation6], 0 }
   0x2   :  { %10 = vsyncpa [#allocation4], 0  ;;  %s244_s12 = smov [#allocation2]   ;;  %s172_s16 = scalar_lea.hbm %s312_s0, 256 }
   0x3   :  { %s16_s13 = sshll.u32 %s244_s12, 4  ;;  %p173_p0 = scmp.ne.s32.totalorder %s312_s0, %s172_s16  ;;  %s17_s13 = int_to_ptr.vmem [resolvable:$true] %s16_s13 }
   0x4   :  { %p176_p1 = scmp.lt.u32.totalorder %s172_s16, %s312_s0 }
   0x6   :  { %p178_p2 = pnand %p176_p1, %p173_p0 }
   0x8   :  { %181 = shalt.err (!%p178_p2)
}
   0x9   :  { %s182_s21 = scalar_lea.vmem %s17_s13, 256  ;;  %p187_p4 = scmp.lt.s32.totalorder %s17_s13, %s17_s13 }
   0xa   :  { %p183_p3 = scmp.ne.s32.totalorder %s17_s13, %s182_s21  ;;  %p188_p5 = scmp.lt.s32.totalorder %s182_s21, %s182_s21 }
   0xc   :  { %p189_p6 = por %p188_p5, %p187_p4 }
   0xe   :  { %p190_p7 = pnand %p189_p6, %p183_p3 }
  0x10   :  { %193 = shalt.err (!%p190_p7)
}
  0x11   :  { %s245_s22 = smov 128   ;;  %s246_s23 = smov 8  }
  0x12   :  { %22 = dma.hbm_to_vmem [thread:$0]  %s312_s0, 256, %s17_s13, [#allocation3], %s245_s22, %s245_s22, %s246_s23  }
  0x13   :  { %s247_s26 = smov [#allocation5]   ;;  %s194_s30 = scalar_lea.hbm %s314_s2, 128 }
  0x14   :  { %s31_s27 = sshll.u32 %s247_s26, 4  ;;  %p195_p8 = scmp.ne.s32.totalorder %s314_s2, %s194_s30  ;;  %s32_s27 = int_to_ptr.vmem [resolvable:$true] %s31_s27 }
  0x15   :  { %p198_p9 = scmp.lt.u32.totalorder %s194_s30, %s314_s2 }
  0x17   :  { %p200_p10 = pnand %p198_p9, %p195_p8 }
  0x19   :  { %203 = shalt.err (!%p200_p10)
}
  0x1a   :  { %s204_s8 = scalar_lea.vmem %s32_s27, 128  ;;  %p209_p12 = scmp.lt.s32.totalorder %s32_s27, %s32_s27 }
  0x1b   :  { %p205_p11 = scmp.ne.s32.totalorder %s32_s27, %s204_s8  ;;  %p210_p13 = scmp.lt.s32.totalorder %s204_s8, %s204_s8 }
  0x1d   :  { %p211_p0 = por %p210_p13, %p209_p12 }
  0x1f   :  { %p212_p1 = pnand %p211_p0, %p205_p11 }
  0x21   :  { %215 = shalt.err (!%p212_p1)
}
  0x22   :  { %34 = dma.hbm_to_vmem [thread:$0]  %s314_s2, 128, %s32_s27, [#allocation6]  }
  0x23   :  { %238 = dma.done.wait [#allocation3], 256  }
  0x24   :  { %239 = vsyncadd [#allocation3], 4294967040 }
  0x25   :  { %240 = dma.done.wait [#allocation6], 128  }
  0x26   :  { %241 = vsyncadd [#allocation6], 4294967168  ;;  %v248_v0 = vmov 0.0|0.0   ;;  %vm249_vm0 = vmmov 0   ;;  %v250_v1 = vmov 0.0   ;;  %vm55_vm1 = vcmask 1041408  }
  0x27   :  { %159 = vmatprep.subr.bf16.mxu0 %v248_v0  ;;  %156 = vmatprep.mubr.msk.f32.mxu0 %vm249_vm0, %v250_v1  ;;  %v42_v2 = vld [vmem:[#allocation2] sm:$0xff]  ;;  %v43_v3 = vld [vmem:[#allocation2 + $0x8] sm:$0x3]  ;;  %vm251_vm2 = vmmov 1   ;;  %v41_v5 = vld [vmem:[#allocation5] sm:$0xff]  ;;  %vm51_vm4 = vcmask 80896  }
  0x28   :  { %vm161_vm3 = vmpackc.low %vm55_vm1, %vm251_vm2  ;;  %v160_v4 = vpack.c.bf16 %v43_v3, %v42_v2  ;;  %v146_v6 = vld [vmem:[%s313_s1] ss:$0 sm:$0xff]  ;;  %s252_s11 = smov [#allocation7]  }
  0x29   :  { %s136_s12 = sshll.u32 %s252_s11, 4  ;;  %s137_s12 = int_to_ptr.vmem [resolvable:$true] %s136_s12 }
  0x2a   :  { %162 = vmatpush3.bf16.msk.msra.mxu0 %vm161_vm3, %v160_v4  ;;  %s216_s13 = scalar_lea.vmem %s137_s12, 128  ;;  %p221_p3 = scmp.lt.s32.totalorder %s137_s12, %s137_s12 }
  0x2b   :  { %p217_p2 = scmp.ne.s32.totalorder %s137_s12, %s216_s13  ;;  %p222_p4 = scmp.lt.s32.totalorder %s216_s13, %s216_s13 }
  0x2d   :  { %157 = vmatmul.mubr.msk.f32.vlgmr.msra.gmra.mrb[0].mxu0 %vm51_vm4, %v41_v5  ;;  %p223_p5 = por %p222_p4, %p221_p3 }
  0x2f   :  { %p224_p6 = pnand %p223_p5, %p217_p2 }
 0x100   :  { %v125_v7 = vpop.f32.mrb[0].mxu0 }
 0x101   :  { %v126_v8 = vadd.f32 %v146_v6, %v125_v7  ;;  %v158_v9 = vpop.f32.mrb[1].mxu0 }
 0x103   :  { %129 = vst.msk [vmem:[#allocation7] sm:$0xff] %vm51_vm4, %v126_v8 }
 0x104   :  { %227 = shalt.err (!%p224_p6)
}
 0x105   :  { %s228_s16 = scalar_lea.hbm %s315_s3, 128 }
 0x106   :  { %p229_p7 = scmp.ne.s32.totalorder %s315_s3, %s228_s16  ;;  %p232_p8 = scmp.lt.u32.totalorder %s228_s16, %s315_s3 }
 0x108   :  { %p234_p9 = pnand %p232_p8, %p229_p7 }
 0x10a   :  { %237 = shalt.err (!%p234_p9)
}
 0x10b   :  { %139 = dma.vmem_to_hbm [thread:$0]  %s137_s12, 128, %s315_s3, [#allocation4]  }
 0x10c   :  { %242 = dma.done.wait [#allocation4], 128  }
 0x10d   :  { %243 = vsyncadd [#allocation4], 4294967168 }
 0x10e   :  { %143 = vsyncpa [#allocation3], 1 }
 0x10f   :  { %144 = vsyncpa [#allocation6], 1 }
 0x110   :  { %145 = vsyncpa [#allocation4], 1 }

</bundles_post_ra>
